<compile_context>
chip_gen: v5e
topology: v5e:2x2
jax: 0.10.0
libtpu: 0.0.40
codegen_flags: <defaults>
</compile_context>

<pallas_src>
import jax
import jax.numpy as jnp
from jax.experimental import pallas as pl
from jax.experimental.pallas import tpu as pltpu

# ---- synthetic "opt" hyper-parameters (small, deterministic) ----------------
INPUT_SIZE = 32      # input_size
LATENT_DIM = 32      # opt.latent_dim
AGE_SIZE   = 8       # opt.ageSize
NOISE_SIZE = 8       # opt.noiseSize
ID_SIZE    = LATENT_DIM - AGE_SIZE - NOISE_SIZE   # layer2 output = 16
BATCH      = 8

OUT_WIDTH  = 128     # lane-dense packed output width (latent|id|age|pad)

_BN_EPS = 1e-5
_LRELU_SLOPE = 0.01


def _lin_bn_lrelu(x, w, gamma, beta):
    """Linear (no bias: cancelled by BN) -> BatchNorm1d (batch stats,
    single-pass variance) -> LeakyReLU."""
    y = jnp.dot(x, w, preferred_element_type=jnp.float32)            # (B, out)
    mean = jnp.mean(y, axis=0, keepdims=True)                        # (1, out)
    mean_sq = jnp.mean(y * y, axis=0, keepdims=True)                 # (1, out)
    var = jnp.maximum(mean_sq - mean * mean, 0.0)                    # biased var
    z = (y - mean) * (jax.lax.rsqrt(var + _BN_EPS) * gamma) + beta
    return jnp.maximum(z, _LRELU_SLOPE * z)                          # LeakyReLU


def embedding_net_kernel(x_ref, w_ref, p_ref, out_ref):
    x = x_ref[...]                                   # (B, 32)
    w = w_ref[...]                                   # (64, 32)
    p = p_ref[...]                                   # (4, 32)

    w1  = w[0:LATENT_DIM, :]                         # (32, 32)
    w23 = w[LATENT_DIM:2 * LATENT_DIM, :]            # (32, 32), cols 24:32 == 0

    g1,  be1  = p[0:1, :], p[1:2, :]
    g23, be23 = p[2:3, :], p[3:4, :]

    # layer 1
    latent = _lin_bn_lrelu(x, w1, g1, be1)                           # (B, 32)
    # fused layers 2+3 (cols 0:16 = ID, 16:24 = age, 24:32 = zero padding)
    z23 = _lin_bn_lrelu(latent, w23, g23, be23)                      # (B, 32)

    pad = jnp.zeros((latent.shape[0], OUT_WIDTH - 2 * LATENT_DIM), jnp.float32)
    out_ref[...] = jnp.concatenate([latent, z23, pad], axis=1).astype(out_ref.dtype)


def pack_params(params):
    """Pack parameters into a (64,32) weight slab + (4,32) BN-affine slab.

    Linear biases are intentionally discarded: BatchNorm's batch-mean
    subtraction makes them a no-op in the forward pass.
    """
    (w1, _b1, g1, be1, w2, _b2, g2, be2, w3, _b3, g3, be3) = params
    pad_cols = LATENT_DIM - ID_SIZE - AGE_SIZE

    w23 = jnp.concatenate([w2, w3], axis=1)                          # (32, 24)
    w23 = jnp.pad(w23, ((0, 0), (0, pad_cols)))                      # (32, 32)
    w_slab = jnp.concatenate([w1, w23], axis=0)                      # (64, 32)

    def row(v, pad_val=0.0):
        v = v.reshape(-1)
        return jnp.pad(v, (0, LATENT_DIM - v.shape[0]), constant_values=pad_val)

    g23  = jnp.concatenate([g2.reshape(-1),  g3.reshape(-1)])
    be23 = jnp.concatenate([be2.reshape(-1), be3.reshape(-1)])

    # gamma padding uses 1.0 so padded (all-zero) features stay exactly zero.
    p_slab = jnp.stack([row(g1), row(be1), row(g23, 1.0), row(be23)], axis=0)
    return w_slab, p_slab                                            # (64,32),(4,32)


def embedding_net_forward(x, w_slab, p_slab):
    B = x.shape[0]
    vmem = pl.BlockSpec(memory_space=pltpu.MemorySpace.VMEM)
    cost = pl.CostEstimate(
        flops=2 * B * (INPUT_SIZE * LATENT_DIM + LATENT_DIM * LATENT_DIM)
              + 10 * B * 2 * LATENT_DIM,
        transcendentals=2 * LATENT_DIM,                  # rsqrt per feature
        bytes_accessed=4 * (x.size + w_slab.size + p_slab.size + B * OUT_WIDTH),
    )
    packed = pl.pallas_call(
        embedding_net_kernel,
        out_shape=jax.ShapeDtypeStruct((B, OUT_WIDTH), jnp.float32),
        in_specs=[vmem, vmem, vmem],
        out_specs=vmem,
        compiler_params=pltpu.CompilerParams(),
        cost_estimate=cost,
    )(x, w_slab, p_slab)

    latent_fea  = packed[:, :LATENT_DIM]
    feature_id  = packed[:, LATENT_DIM:LATENT_DIM + ID_SIZE]
    feature_age = packed[:, LATENT_DIM + ID_SIZE:LATENT_DIM + ID_SIZE + AGE_SIZE]
    return feature_age, feature_id, latent_fea


def init_params(key):
    """Deterministic parameter init. Linear weights stored (in, out)."""
    keys = jax.random.split(key, 6)

    def linear(kw, kb, fan_in, fan_out):
        bound = 1.0 / jnp.sqrt(fan_in)
        w = jax.random.uniform(kw, (fan_in, fan_out), jnp.float32, -bound, bound)
        b = jax.random.uniform(kb, (1, fan_out), jnp.float32, -bound, bound)
        return w, b

    w1, b1 = linear(keys[0], keys[1], INPUT_SIZE, LATENT_DIM)
    w2, b2 = linear(keys[2], keys[3], LATENT_DIM, ID_SIZE)
    w3, b3 = linear(keys[4], keys[5], LATENT_DIM, AGE_SIZE)

    # BatchNorm affine params: gamma=1, beta=0 (PyTorch default init).
    g1, be1 = jnp.ones((1, LATENT_DIM), jnp.float32), jnp.zeros((1, LATENT_DIM), jnp.float32)
    g2, be2 = jnp.ones((1, ID_SIZE), jnp.float32), jnp.zeros((1, ID_SIZE), jnp.float32)
    g3, be3 = jnp.ones((1, AGE_SIZE), jnp.float32), jnp.zeros((1, AGE_SIZE), jnp.float32)

    return (w1, b1, g1, be1, w2, b2, g2, be2, w3, b3, g3, be3)


def reference_forward(x, params):
    """Pure-JAX reference matching the PyTorch forward (with Linear biases,
    two-pass variance, unfused layers)."""
    (w1, b1, g1, be1, w2, b2, g2, be2, w3, b3, g3, be3) = params

    def layer(h, w, b, g, be):
        y = h @ w + b
        mean = jnp.mean(y, axis=0, keepdims=True)
        var = jnp.mean((y - mean) ** 2, axis=0, keepdims=True)
        z = (y - mean) * jax.lax.rsqrt(var + _BN_EPS) * g + be
        return jnp.where(z >= 0, z, _LRELU_SLOPE * z)

    latent = layer(x, w1, b1, g1, be1)
    fid = layer(latent, w2, b2, g2, be2)
    fage = layer(latent, w3, b3, g3, be3)
    return fage, fid, latent


if __name__ == "__main__":
    key = jax.random.PRNGKey(0)
    k_x, k_p = jax.random.split(key)
    x = jax.random.normal(k_x, (BATCH, INPUT_SIZE), jnp.float32)
    params = init_params(k_p)
    w_slab, p_slab = pack_params(params)

    feature_age, feature_id, latent_fea = embedding_net_forward(x, w_slab, p_slab)
    jax.block_until_ready((feature_age, feature_id, latent_fea))

    assert feature_age.shape == (BATCH, AGE_SIZE)
    assert feature_id.shape == (BATCH, ID_SIZE)
    assert latent_fea.shape == (BATCH, LATENT_DIM)

    ref_age, ref_id, ref_lat = reference_forward(x, params)
    assert jnp.allclose(latent_fea, ref_lat, atol=1e-4, rtol=1e-4)
    assert jnp.allclose(feature_id, ref_id, atol=1e-4, rtol=1e-4)
    assert jnp.allclose(feature_age, ref_age, atol=1e-4, rtol=1e-4)

    print("KERNEL_OK")
</pallas_src>

<mosaic_0001>
module attributes {stable_mosaic.version = 11 : i64} {
  func.func @embedding_net_kernel(%arg0: memref<8x32xf32, #tpu.memory_space<vmem>>, %arg1: memref<64x32xf32, #tpu.memory_space<vmem>>, %arg2: memref<4x32xf32, #tpu.memory_space<vmem>>, %arg3: memref<8x128xf32, #tpu.memory_space<vmem>>) attributes {dimension_semantics = [], scalar_prefetch = 0 : i64, scratch_operands = 0 : i64, tpu.core_type = #tpu.core_type<tc>} {
    %c0 = arith.constant 0 : index
    %c0_0 = arith.constant 0 : index
    %0 = vector.load %arg0[%c0, %c0_0] : memref<8x32xf32, #tpu.memory_space<vmem>>, vector<8x32xf32>
    %c0_1 = arith.constant 0 : index
    %c0_2 = arith.constant 0 : index
    %1 = vector.load %arg1[%c0_1, %c0_2] : memref<64x32xf32, #tpu.memory_space<vmem>>, vector<64x32xf32>
    %c0_3 = arith.constant 0 : index
    %c0_4 = arith.constant 0 : index
    %2 = vector.load %arg2[%c0_3, %c0_4] : memref<4x32xf32, #tpu.memory_space<vmem>>, vector<4x32xf32>
    %3 = vector.extract_strided_slice %1 {offsets = [0, 0], sizes = [32, 32], strides = [1, 1]} : vector<64x32xf32> to vector<32x32xf32>
    %4 = vector.extract_strided_slice %1 {offsets = [32, 0], sizes = [32, 32], strides = [1, 1]} : vector<64x32xf32> to vector<32x32xf32>
    %5 = vector.extract_strided_slice %2 {offsets = [0, 0], sizes = [1, 32], strides = [1, 1]} : vector<4x32xf32> to vector<1x32xf32>
    %6 = vector.extract_strided_slice %2 {offsets = [1, 0], sizes = [1, 32], strides = [1, 1]} : vector<4x32xf32> to vector<1x32xf32>
    %7 = vector.extract_strided_slice %2 {offsets = [2, 0], sizes = [1, 32], strides = [1, 1]} : vector<4x32xf32> to vector<1x32xf32>
    %8 = vector.extract_strided_slice %2 {offsets = [3, 0], sizes = [1, 32], strides = [1, 1]} : vector<4x32xf32> to vector<1x32xf32>
    %cst = arith.constant dense<0.000000e+00> : vector<8x32xf32>
    %9 = tpu.matmul %0, %3, %cst {dimension_numbers = #tpu.dot_dimension_numbers<[1], [0], [0], [1], [0, 0, 1, 1], [], []>} : vector<8x32xf32>, vector<32x32xf32>, vector<8x32xf32> -> vector<8x32xf32>
    %cst_5 = arith.constant dense<0.000000e+00> : vector<32xf32>
    %10 = vector.multi_reduction <add>, %9, %cst_5 [0] : vector<8x32xf32> to vector<32xf32>
    %11 = vector.shape_cast %10 : vector<32xf32> to vector<1x32xf32>
    %cst_6 = arith.constant 8.000000e+00 : f32
    %12 = vector.broadcast %cst_6 : f32 to vector<1x32xf32>
    %13 = arith.divf %11, %12 : vector<1x32xf32>
    %14 = arith.mulf %9, %9 : vector<8x32xf32>
    %cst_7 = arith.constant dense<0.000000e+00> : vector<32xf32>
    %15 = vector.multi_reduction <add>, %14, %cst_7 [0] : vector<8x32xf32> to vector<32xf32>
    %16 = vector.shape_cast %15 : vector<32xf32> to vector<1x32xf32>
    %cst_8 = arith.constant 8.000000e+00 : f32
    %17 = vector.broadcast %cst_8 : f32 to vector<1x32xf32>
    %18 = arith.divf %16, %17 : vector<1x32xf32>
    %19 = arith.mulf %13, %13 : vector<1x32xf32>
    %20 = arith.subf %18, %19 : vector<1x32xf32>
    %cst_9 = arith.constant 0.000000e+00 : f32
    %21 = vector.broadcast %cst_9 : f32 to vector<1x32xf32>
    %22 = arith.maximumf %20, %21 : vector<1x32xf32>
    %23 = vector.broadcast %13 : vector<1x32xf32> to vector<8x32xf32>
    %24 = arith.subf %9, %23 : vector<8x32xf32>
    %cst_10 = arith.constant 9.99999974E-6 : f32
    %25 = vector.broadcast %cst_10 : f32 to vector<1x32xf32>
    %26 = arith.addf %22, %25 : vector<1x32xf32>
    %27 = math.rsqrt %26 : vector<1x32xf32>
    %28 = arith.mulf %27, %5 : vector<1x32xf32>
    %29 = vector.broadcast %28 : vector<1x32xf32> to vector<8x32xf32>
    %30 = arith.mulf %24, %29 : vector<8x32xf32>
    %31 = vector.broadcast %6 : vector<1x32xf32> to vector<8x32xf32>
    %32 = arith.addf %30, %31 : vector<8x32xf32>
    %cst_11 = arith.constant 0.00999999977 : f32
    %33 = vector.broadcast %cst_11 : f32 to vector<8x32xf32>
    %34 = arith.mulf %33, %32 : vector<8x32xf32>
    %35 = arith.maximumf %32, %34 : vector<8x32xf32>
    %cst_12 = arith.constant dense<0.000000e+00> : vector<8x32xf32>
    %36 = tpu.matmul %35, %4, %cst_12 {dimension_numbers = #tpu.dot_dimension_numbers<[1], [0], [0], [1], [0, 0, 1, 1], [], []>} : vector<8x32xf32>, vector<32x32xf32>, vector<8x32xf32> -> vector<8x32xf32>
    %cst_13 = arith.constant dense<0.000000e+00> : vector<32xf32>
    %37 = vector.multi_reduction <add>, %36, %cst_13 [0] : vector<8x32xf32> to vector<32xf32>
    %38 = vector.shape_cast %37 : vector<32xf32> to vector<1x32xf32>
    %cst_14 = arith.constant 8.000000e+00 : f32
    %39 = vector.broadcast %cst_14 : f32 to vector<1x32xf32>
    %40 = arith.divf %38, %39 : vector<1x32xf32>
    %41 = arith.mulf %36, %36 : vector<8x32xf32>
    %cst_15 = arith.constant dense<0.000000e+00> : vector<32xf32>
    %42 = vector.multi_reduction <add>, %41, %cst_15 [0] : vector<8x32xf32> to vector<32xf32>
    %43 = vector.shape_cast %42 : vector<32xf32> to vector<1x32xf32>
    %cst_16 = arith.constant 8.000000e+00 : f32
    %44 = vector.broadcast %cst_16 : f32 to vector<1x32xf32>
    %45 = arith.divf %43, %44 : vector<1x32xf32>
    %46 = arith.mulf %40, %40 : vector<1x32xf32>
    %47 = arith.subf %45, %46 : vector<1x32xf32>
    %cst_17 = arith.constant 0.000000e+00 : f32
    %48 = vector.broadcast %cst_17 : f32 to vector<1x32xf32>
    %49 = arith.maximumf %47, %48 : vector<1x32xf32>
    %50 = vector.broadcast %40 : vector<1x32xf32> to vector<8x32xf32>
    %51 = arith.subf %36, %50 : vector<8x32xf32>
    %cst_18 = arith.constant 9.99999974E-6 : f32
    %52 = vector.broadcast %cst_18 : f32 to vector<1x32xf32>
    %53 = arith.addf %49, %52 : vector<1x32xf32>
    %54 = math.rsqrt %53 : vector<1x32xf32>
    %55 = arith.mulf %54, %7 : vector<1x32xf32>
    %56 = vector.broadcast %55 : vector<1x32xf32> to vector<8x32xf32>
    %57 = arith.mulf %51, %56 : vector<8x32xf32>
    %58 = vector.broadcast %8 : vector<1x32xf32> to vector<8x32xf32>
    %59 = arith.addf %57, %58 : vector<8x32xf32>
    %cst_19 = arith.constant 0.00999999977 : f32
    %60 = vector.broadcast %cst_19 : f32 to vector<8x32xf32>
    %61 = arith.mulf %60, %59 : vector<8x32xf32>
    %62 = arith.maximumf %59, %61 : vector<8x32xf32>
    %cst_20 = arith.constant 0.000000e+00 : f32
    %63 = vector.broadcast %cst_20 : f32 to vector<8x64xf32>
    %64 = tpu.concatenate %35, %62, %63 in 1 : vector<8x32xf32>, vector<8x32xf32>, vector<8x64xf32> -> vector<8x128xf32>
    %c0_21 = arith.constant 0 : index
    %c0_22 = arith.constant 0 : index
    %65 = vector.load %arg3[%c0_21, %c0_22] : memref<8x128xf32, #tpu.memory_space<vmem>>, vector<8x128xf32>
    tpu.vector_store %arg3[%c0_21, %c0_22], %64 {strides = array<i32>} : memref<8x128xf32, #tpu.memory_space<vmem>>, vector<8x128xf32>,
    return
  }
}

</mosaic_0001>

<bundles_post_ra>
// kernel: tpu_custom_call.1
= control target key start
LH: loop header
LB: loop body
LE: loop exit
PB: predicated region body
PF: predicated region fallthrough
CT: control target
= control target key end

     0   :  { %s281_s0 = inlined_call_operand.vmem [shape: f32[8,32], index: 0, kind: input, shape index: {}]   ;;  %s282_s1 = inlined_call_operand.vmem [shape: f32[64,32], index: 1, kind: input, shape index: {}]   ;;  %s283_s2 = inlined_call_operand.vmem [shape: f32[4,32], index: 2, kind: input, shape index: {}]   ;;  %s284_s3 = inlined_call_operand.hbm [shape: f32[8,128], index: 3, kind: output, shape index: {}]  }
   0x1   :  { %v19_v0 = vld [vmem:[%s282_s1 + $0x18] sm:$0xff]  ;;  %v18_v1 = vld [vmem:[%s282_s1 + $0x10] sm:$0xff]  ;;  %v17_v2 = vld [vmem:[%s282_s1 + $0x8] sm:$0xff] }
   0x2   :  { %41 = vmatpush.msra.mxu0 %v19_v0 }
   0x3   :  { %8 = vsyncpa [#allocation3], 0  ;;  %v16_v3 = vld [vmem:[%s282_s1] sm:$0xff]  ;;  %vm25_vm0 = vcmask 261120   ;;  %v218_v5 = vmov 8.0   ;;  %v23_v29 = vld [vmem:[%s282_s1 + $0x38] sm:$0xff] }
   0x4   :  { %42 = vmatpush.msra.mxu0 %v18_v1  ;;  %v15_v4 = vld [vmem:[%s281_s0] sm:$0xff]  ;;  %186 = vrcp.f32 %v218_v5  ;;  %110 = vmatpush.msra.mxu1 %v23_v29  ;;  %v22_v32 = vld [vmem:[%s282_s1 + $0x30] sm:$0xff]  ;;  %v21_v33 = vld [vmem:[%s282_s1 + $0x28] sm:$0xff]  ;;  %s172_s7 = sshll.u32 %s284_s3, 4  ;;  %vm162_vm8 = vcmask 523264   ;;  %s173_s7 = int_to_ptr.hbm [resolvable:$true] %s172_s7 }
   0x5   :  { %v20_v35 = vld [vmem:[%s282_s1 + $0x20] sm:$0xff]  ;;  %s219_s1 = smov 32  }
   0x6   :  { %43 = vmatpush.msra.mxu0 %v17_v2  ;;  %111 = vmatpush.msra.mxu1 %v22_v32  ;;  %v24_v43 = vld [vmem:[%s283_s2] sm:$0xf]  ;;  %s220_s2 = smov [#allocation2]  }
   0x7   :  { %v91_v49 = vperm.slane %v24_v43, 1  ;;  %s170_s4 = sshll.u32 %s220_s2, 4  ;;  %s171_s4 = int_to_ptr.vmem [resolvable:$true] %s170_s4 }
   0x8   :  { %44 = vmatpush.msra.mxu0 %v16_v3  ;;  %112 = vmatpush.msra.mxu1 %v21_v33 }
   0x9   :  { %181 = vmatmul.msk.f32.vlgmr.msra.gmra.mxu0 %vm25_vm0, %v15_v4 }
   0xa   :  { %v187_v6 = vpop.eup %186  ;;  %113 = vmatpush.msra.mxu1 %v20_v35 }
   0xb   :  { %v57_v7 = vmul.f32 8.0, %v187_v6  ;;  %vm61_vm1 = vweird.f32 %v187_v6 }
   0xd   :  { %v58_v8 = vsub.f32 1.0, %v57_v7 }
   0xf   :  { %v59_v13 = vmul.f32 %v187_v6, %v58_v8 }
  0x11   :  { %v60_v19 = vadd.f32 %v187_v6, %v59_v13 }
  0x13   :  { %v62_v24 = vsel %vm61_vm1, %v187_v6, %v60_v19 }
  0x86   :  { %v46_v9 = vpop.f32.mrf.mxu0 }
  0x87   :  { %v49_v10 = vsel %vm25_vm0, %v46_v9, 0.0  ;;  %v64_v11 = vmul.f32 %v46_v9, %v46_v9 }
  0x88   :  { %v50_v12 = vrot.slane %v49_v10, 4 }
  0x89   :  { %v65_v14 = vsel %vm25_vm0, %v64_v11, 0.0 }
  0x8a   :  { %v51_v15 = vadd.f32 %v50_v12, %v49_v10  ;;  %v66_v16 = vrot.slane %v65_v14, 4 }
  0x8c   :  { %v52_v17 = vrot.slane %v51_v15, 2  ;;  %v67_v18 = vadd.f32 %v66_v16, %v65_v14 }
  0x8e   :  { %v53_v20 = vadd.f32 %v52_v17, %v51_v15  ;;  %v68_v21 = vrot.slane %v67_v18, 2 }
  0x90   :  { %v54_v22 = vrot.slane %v53_v20, 1  ;;  %v69_v23 = vadd.f32 %v68_v21, %v67_v18 }
  0x92   :  { %v55_v25 = vadd.f32 %v54_v22, %v53_v20  ;;  %v70_v26 = vrot.slane %v69_v23, 1  ;;  %v153_v22 = vperm.slane %v24_v43, 3 }
  0x94   :  { %v63_v27 = vmul.f32 %v62_v24, %v55_v25  ;;  %v71_v28 = vadd.f32 %v70_v26, %v69_v23 }
  0x96   :  { %v72_v30 = vmul.f32 %v71_v28, %v62_v24  ;;  %v73_v31 = vmul.f32 %v63_v27, %v63_v27  ;;  %v76_v47 = vsub.f32 %v46_v9, %v63_v27 }
  0x98   :  { %v74_v34 = vsub.f32 %v72_v30, %v73_v31 }
  0x9a   :  { %v75_v36 = vmax.f32 %v74_v34, 0.0 }
  0x9c   :  { %v77_v37 = vadd.f32 1e-05, %v75_v36 }
  0x9e   :  { %188 = vrsqrt.f32 %v77_v37  ;;  %vm84_vm3 = vweird.f32 %v77_v37 }
  0xa4   :  { %v189_v38 = vpop.eup %188 }
  0xa5   :  { %v79_v39 = vmul.f32 %v189_v38, %v77_v37  ;;  %vm85_vm2 = vweird.f32 %v189_v38 }
  0xa6   :  { %vm86_vm4 = vmor %vm84_vm3, %vm85_vm2 }
  0xa7   :  { %v80_v40 = vmul.f32 %v189_v38, %v79_v39 }
  0xa9   :  { %v81_v41 = vmul.f32 0.5, %v80_v40 }
  0xab   :  { %v82_v42 = vsub.f32 1.5, %v81_v41 }
  0xad   :  { %v83_v44 = vmul.f32 %v189_v38, %v82_v42 }
  0xaf   :  { %v87_v45 = vsel %vm86_vm4, %v189_v38, %v83_v44 }
  0xb0   :  { %v88_v46 = vmul.f32 %v87_v45, %v24_v43 }
  0xb2   :  { %v89_v48 = vperm.slane %v88_v46, 0 }
  0xb4   :  { %v90_v50 = vmul.f32 %v89_v48, %v76_v47 }
  0xb6   :  { %v92_v51 = vadd.f32 %v91_v49, %v90_v50 }
  0xb8   :  { %v93_v52 = vmul.f32 0.01, %v92_v51 }
  0xba   :  { %v94_v53 = vmax.f32 %v92_v51, %v93_v52 }
  0xbc   :  { %182 = vmatmul.msk.f32.vlgmr.msra.gmra.mxu1 %vm25_vm0, %v94_v53 }
 0x139   :  { %v115_v54 = vpop.f32.mrf.mxu1 }
 0x13a   :  { %v118_v55 = vsel %vm25_vm0, %v115_v54, 0.0  ;;  %v126_v56 = vmul.f32 %v115_v54, %v115_v54 }
 0x13b   :  { %v119_v57 = vrot.slane %v118_v55, 4 }
 0x13c   :  { %v127_v58 = vsel %vm25_vm0, %v126_v56, 0.0 }
 0x13d   :  { %v120_v59 = vadd.f32 %v119_v57, %v118_v55  ;;  %v128_v60 = vrot.slane %v127_v58, 4 }
 0x13f   :  { %v121_v61 = vrot.slane %v120_v59, 2  ;;  %v129_v62 = vadd.f32 %v128_v60, %v127_v58 }
 0x141   :  { %v122_v63 = vadd.f32 %v121_v61, %v120_v59  ;;  %v130_v0 = vrot.slane %v129_v62, 2 }
 0x143   :  { %v123_v1 = vrot.slane %v122_v63, 1  ;;  %v131_v2 = vadd.f32 %v130_v0, %v129_v62 }
 0x145   :  { %v124_v3 = vadd.f32 %v123_v1, %v122_v63  ;;  %v132_v4 = vrot.slane %v131_v2, 1 }
 0x147   :  { %v125_v5 = vmul.f32 %v124_v3, %v62_v24  ;;  %v133_v6 = vadd.f32 %v132_v4, %v131_v2 }
 0x149   :  { %v134_v7 = vmul.f32 %v133_v6, %v62_v24  ;;  %v135_v8 = vmul.f32 %v125_v5, %v125_v5  ;;  %v138_v20 = vsub.f32 %v115_v54, %v125_v5 }
 0x14b   :  { %v136_v9 = vsub.f32 %v134_v7, %v135_v8 }
 0x14d   :  { %v137_v10 = vmax.f32 %v136_v9, 0.0 }
 0x14f   :  { %v139_v11 = vadd.f32 1e-05, %v137_v10 }
 0x151   :  { %190 = vrsqrt.f32 %v139_v11  ;;  %vm146_vm6 = vweird.f32 %v139_v11 }
 0x157   :  { %v191_v12 = vpop.eup %190 }
 0x158   :  { %v141_v13 = vmul.f32 %v191_v12, %v139_v11  ;;  %vm147_vm5 = vweird.f32 %v191_v12 }
 0x159   :  { %vm148_vm7 = vmor %vm146_vm6, %vm147_vm5 }
 0x15a   :  { %v142_v14 = vmul.f32 %v191_v12, %v141_v13 }
 0x15c   :  { %v143_v15 = vmul.f32 0.5, %v142_v14 }
 0x15e   :  { %v144_v16 = vsub.f32 1.5, %v143_v15 }
 0x160   :  { %v145_v17 = vmul.f32 %v191_v12, %v144_v16 }
 0x162   :  { %v149_v18 = vsel %vm148_vm7, %v191_v12, %v145_v17 }
 0x163   :  { %v150_v19 = vmul.f32 %v149_v18, %v24_v43 }
 0x165   :  { %v151_v21 = vperm.slane %v150_v19, 2 }
 0x167   :  { %v152_v23 = vmul.f32 %v151_v21, %v138_v20 }
 0x169   :  { %v154_v24 = vadd.f32 %v153_v22, %v152_v23 }
 0x16b   :  { %v155_v25 = vmul.f32 0.01, %v154_v24 }
 0x16d   :  { %v156_v26 = vmax.f32 %v154_v24, %v155_v25 }
 0x16f   :  { %158 = vrot.lane.b32.xlu0 %v156_v26, %s219_s1 }
 0x1e1   :  { %v159_v27 = vpop.permute.xlu0 %158 }
 0x1e2   :  { %v161_v28 = vsel %vm25_vm0, %v94_v53, %v159_v27 }
 0x1e3   :  { %v163_v29 = vsel %vm162_vm8, %v161_v28, 0.0 }
 0x1e4   :  { %164 = vst [vmem:[#allocation2] sm:$0xff] %v163_v29 }
 0x1e5   :  { %175 = dma.vmem_to_hbm [thread:$0]  %s171_s4, 128, %s173_s7, [#allocation3]  }
 0x1e6   :  { %216 = dma.done.wait [#allocation3], 128  }
 0x1e7   :  { %217 = vsyncadd [#allocation3], 4294967168 }
 0x1e8   :  { %180 = vsyncpa [#allocation3], 1 }

</bundles_post_ra>
